<compile_context>
chip_gen: v7x
topology: tpu7x:2x2x1
jax: 0.10.0
libtpu: 0.0.40
codegen_flags: <defaults>
</compile_context>

<pallas_src>
import jax
import jax.numpy as jnp
from jax.experimental import pallas as pl
from jax.experimental.pallas import tpu as pltpu


def _sigmoid(x):
    # One EUP tanh + cheap VPU mul/add; avoids exp + divide.
    return 0.5 * jnp.tanh(0.5 * x) + 0.5


def _control_nn_kernel(x_ref, w1a_ref, w1b_ref, b1_ref, w2_ref, b2_ref,
                       w3_ref, b3_ref, o_ref):
    # x_ref: (2, BT) -- batch on lanes.
    x0 = x_ref[0:1, :]                                    # (1, BT)
    x1 = x_ref[1:2, :]                                    # (1, BT)

    # fc1 (K=2): two broadcast multiply-adds on the VPU, no MXU.
    h1 = _sigmoid(w1a_ref[...] * x0 + w1b_ref[...] * x1 + b1_ref[...])  # (L1, BT)

    # fc2 (L2 x L1 = 16x16): single MXU pass; lanes carry the batch.
    h2 = _sigmoid(
        jnp.dot(w2_ref[...], h1, preferred_element_type=jnp.float32)
        + b2_ref[...])                                                  # (L2, BT)

    # fc3 (N=1): elementwise multiply (VPU) + sublane reduce (XLU), no MXU.
    y = jnp.sum(w3_ref[...] * h2, axis=0, keepdims=True) + b3_ref[0]    # (1, BT)
    o_ref[...] = jnp.tanh(y).astype(o_ref.dtype)


def control_nn_forward(x, params, *, block_b=16384):
    """x: (B, 2) float32.  Returns (B, 1) float32, matching Control_NN.forward."""
    w1, b1, w2, b2, w3, b3 = (params["w1"], params["b1"], params["w2"],
                              params["b2"], params["w3"], params["b3"])
    B = x.shape[0]

    # ---- batch tile selection ----------------------------------------------
    # Big tiles amortise the fixed per-grid-step pipeline overhead; keep >= 2
    # balanced steps whenever the batch spans >= 2 lane chunks so both v7x
    # TensorCores get work on the "parallel" axis.
    block_b = max(128, (int(block_b) // 128) * 128)
    n128 = pl.cdiv(B, 128)                       # number of 128-lane chunks
    bt = min(block_b, n128 * 128)
    if n128 >= 2 and pl.cdiv(n128 * 128, bt) < 2:
        bt = pl.cdiv(n128, 2) * 128
    grid = (pl.cdiv(B, bt),)

    # Lane-major layout: x^T (2, B).  No jnp.pad -- ragged last tile handled
    # by Pallas boundary masking, so the wrapper adds only one extra pass.
    # TODO(synk): control-loop callers can hand x in as (2, B) upstream to
    # drop this transpose's HBM pass entirely.
    xt = x.T

    # Split fc1's two input columns in the wrapper so every in-kernel
    # broadcast starts at lane/sublane offset 0.
    w1a = w1[:, 0:1]                             # (L1, 1)
    w1b = w1[:, 1:2]                             # (L1, 1)

    # Resident weights/biases: constant block index (0, 0) each step, so the
    # Mosaic pipeline skips re-issuing their DMAs after the first iteration.
    resident = lambda a: pl.BlockSpec(a.shape, lambda i: (0, 0))

    cost = pl.CostEstimate(
        flops=int(2 * B * (2 * 16 + 16 * 16 + 16)),   # fc1 + fc2 + fc3
        transcendentals=int(33 * B),                  # 16 + 16 sigmoids + tanh
        bytes_accessed=int(12 * B),                   # 8 B in + 4 B out / elem
    )

    out_t = pl.pallas_call(
        _control_nn_kernel,
        out_shape=jax.ShapeDtypeStruct((1, B), jnp.float32),
        grid=grid,
        in_specs=[
            pl.BlockSpec((2, bt), lambda i: (0, i)),   # x tile, batch on lanes
            resident(w1a), resident(w1b), resident(b1),
            resident(w2), resident(b2), resident(w3),
            pl.BlockSpec(memory_space=pltpu.MemorySpace.SMEM),  # scalar b3
        ],
        out_specs=pl.BlockSpec((1, bt), lambda i: (0, i)),      # lane-dense out
        compiler_params=pltpu.CompilerParams(
            dimension_semantics=("parallel",),   # shard batch across TCs (v7x)
            vmem_limit_bytes=48 * 1024 * 1024,   # headroom for 16K-32K tiles
        ),
        cost_estimate=cost,
    )(xt, w1a, w1b, b1, w2, b2, w3, b3)

    return out_t.T                                    # (B, 1)


def init_params(key, layer_1_size=16, layer_2_size=16):
    """Deterministic init mimicking torch.nn.Linear default U[-1/sqrt(fan_in), +].

    Stored layout: w1 (L1, 2), w2 (L2, L1) are (out, in); w3 is (L2, 1) so the
    kernel can lane-broadcast it; biases are column vectors; b3 is shape (1,).
    """
    def linear(k, fan_in, fan_out):
        kw, kb = jax.random.split(k)
        bound = 1.0 / float(fan_in) ** 0.5
        w = jax.random.uniform(kw, (fan_out, fan_in), jnp.float32, -bound, bound)
        b = jax.random.uniform(kb, (fan_out, 1), jnp.float32, -bound, bound)
        return w, b

    k1, k2, k3 = jax.random.split(key, 3)
    w1, b1 = linear(k1, 2, layer_1_size)               # (L1, 2), (L1, 1)
    w2, b2 = linear(k2, layer_1_size, layer_2_size)    # (L2, L1), (L2, 1)
    w3t, b3 = linear(k3, layer_2_size, 1)              # (1, L2), (1, 1)
    return dict(w1=w1, b1=b1, w2=w2, b2=b2,
                w3=w3t.T,                 # (L2, 1)
                b3=b3.reshape((1,)))      # scalar


def reference_forward(x, p):
    h1 = jax.nn.sigmoid(x @ p["w1"].T + p["b1"].T)
    h2 = jax.nn.sigmoid(h1 @ p["w2"].T + p["b2"].T)
    return jnp.tanh(h2 @ p["w3"] + p["b3"])


if __name__ == "__main__":
    key = jax.random.PRNGKey(0)
    kx, kp = jax.random.split(key)
    params = init_params(kp, layer_1_size=16, layer_2_size=16)

    # Batched case: exercises the tiled grid (2 balanced "parallel" steps).
    B = 1024
    x = jax.random.normal(kx, (B, 2), dtype=jnp.float32)
    out = jax.block_until_ready(control_nn_forward(x, params))
    ref = reference_forward(x, params)
    assert out.shape == (B, 1)
    assert jnp.allclose(out, ref, atol=5e-5, rtol=5e-5)

    # Tiny control-loop batch: exercises the partial-tile masking path.
    Bs = 8
    xs = jax.random.normal(jax.random.PRNGKey(1), (Bs, 2), dtype=jnp.float32)
    outs = jax.block_until_ready(control_nn_forward(xs, params))
    refs = reference_forward(xs, params)
    assert outs.shape == (Bs, 1)
    assert jnp.allclose(outs, refs, atol=5e-5, rtol=5e-5)

    # Ragged (non-multiple-of-128) batch with a large requested tile.
    Br = 1000
    xr = jax.random.normal(jax.random.PRNGKey(2), (Br, 2), dtype=jnp.float32)
    outr = jax.block_until_ready(control_nn_forward(xr, params, block_b=16384))
    refr = reference_forward(xr, params)
    assert outr.shape == (Br, 1)
    assert jnp.allclose(outr, refr, atol=5e-5, rtol=5e-5)

    print("KERNEL_OK")
</pallas_src>

<mosaic_0001>
module attributes {stable_mosaic.version = 11 : i64} {
  func.func @_control_nn_kernel(%arg0: i32, %arg1: memref<2x512xf32, #tpu.memory_space<vmem>>, %arg2: memref<16x1xf32, #tpu.memory_space<vmem>>, %arg3: memref<16x1xf32, #tpu.memory_space<vmem>>, %arg4: memref<16x1xf32, #tpu.memory_space<vmem>>, %arg5: memref<16x16xf32, #tpu.memory_space<vmem>>, %arg6: memref<16x1xf32, #tpu.memory_space<vmem>>, %arg7: memref<16x1xf32, #tpu.memory_space<vmem>>, %arg8: memref<1xf32, #tpu.memory_space<smem>>, %arg9: memref<1x512xf32, #tpu.memory_space<vmem>>) attributes {dimension_semantics = [#tpu.dimension_semantics<parallel>], iteration_bounds = array<i64: 2>, scalar_prefetch = 0 : i64, scratch_operands = 0 : i64, tpu.core_type = #tpu.core_type<tc>, window_params = [{transform_indices = @transform_0, window_bounds = array<i64: 2, 512>}, {pipeline_mode = #tpu.pipeline_mode<synchronous>, transform_indices = @transform_1, window_bounds = array<i64: 16, 1>}, {pipeline_mode = #tpu.pipeline_mode<synchronous>, transform_indices = @transform_2, window_bounds = array<i64: 16, 1>}, {pipeline_mode = #tpu.pipeline_mode<synchronous>, transform_indices = @transform_3, window_bounds = array<i64: 16, 1>}, {pipeline_mode = #tpu.pipeline_mode<synchronous>, transform_indices = @transform_4, window_bounds = array<i64: 16, 16>}, {pipeline_mode = #tpu.pipeline_mode<synchronous>, transform_indices = @transform_5, window_bounds = array<i64: 16, 1>}, {pipeline_mode = #tpu.pipeline_mode<synchronous>, transform_indices = @transform_6, window_bounds = array<i64: 16, 1>}, {transform_indices = @transform_7, window_bounds = array<i64: 1>}, {transform_indices = @transform_8, window_bounds = array<i64: 1, 512>}]} {
    %c0 = arith.constant 0 : index
    %c0_0 = arith.constant 0 : index
    %0 = vector.load %arg1[%c0, %c0_0] : memref<2x512xf32, #tpu.memory_space<vmem>>, vector<1x512xf32>
    %c1 = arith.constant 1 : index
    %c0_1 = arith.constant 0 : index
    %1 = vector.load %arg1[%c1, %c0_1] : memref<2x512xf32, #tpu.memory_space<vmem>>, vector<1x512xf32>
    %c0_2 = arith.constant 0 : index
    %c0_3 = arith.constant 0 : index
    %2 = vector.load %arg2[%c0_2, %c0_3] : memref<16x1xf32, #tpu.memory_space<vmem>>, vector<16x1xf32>
    %3 = vector.broadcast %2 : vector<16x1xf32> to vector<16x512xf32>
    %4 = vector.broadcast %0 : vector<1x512xf32> to vector<16x512xf32>
    %5 = arith.mulf %3, %4 : vector<16x512xf32>
    %c0_4 = arith.constant 0 : index
    %c0_5 = arith.constant 0 : index
    %6 = vector.load %arg3[%c0_4, %c0_5] : memref<16x1xf32, #tpu.memory_space<vmem>>, vector<16x1xf32>
    %7 = vector.broadcast %6 : vector<16x1xf32> to vector<16x512xf32>
    %8 = vector.broadcast %1 : vector<1x512xf32> to vector<16x512xf32>
    %9 = arith.mulf %7, %8 : vector<16x512xf32>
    %10 = arith.addf %5, %9 : vector<16x512xf32>
    %c0_6 = arith.constant 0 : index
    %c0_7 = arith.constant 0 : index
    %11 = vector.load %arg4[%c0_6, %c0_7] : memref<16x1xf32, #tpu.memory_space<vmem>>, vector<16x1xf32>
    %12 = vector.broadcast %11 : vector<16x1xf32> to vector<16x512xf32>
    %13 = arith.addf %10, %12 : vector<16x512xf32>
    %cst = arith.constant 5.000000e-01 : f32
    %14 = vector.broadcast %cst : f32 to vector<16x512xf32>
    %15 = arith.mulf %14, %13 : vector<16x512xf32>
    %16 = math.tanh %15 : vector<16x512xf32>
    %cst_8 = arith.constant 5.000000e-01 : f32
    %17 = vector.broadcast %cst_8 : f32 to vector<16x512xf32>
    %18 = arith.mulf %17, %16 : vector<16x512xf32>
    %cst_9 = arith.constant 5.000000e-01 : f32
    %19 = vector.broadcast %cst_9 : f32 to vector<16x512xf32>
    %20 = arith.addf %18, %19 : vector<16x512xf32>
    %c0_10 = arith.constant 0 : index
    %c0_11 = arith.constant 0 : index
    %21 = vector.load %arg5[%c0_10, %c0_11] : memref<16x16xf32, #tpu.memory_space<vmem>>, vector<16x16xf32>
    %cst_12 = arith.constant dense<0.000000e+00> : vector<16x512xf32>
    %22 = tpu.matmul %21, %20, %cst_12 {dimension_numbers = #tpu.dot_dimension_numbers<[1], [0], [0], [1], [0, 0, 1, 1], [], []>} : vector<16x16xf32>, vector<16x512xf32>, vector<16x512xf32> -> vector<16x512xf32>
    %c0_13 = arith.constant 0 : index
    %c0_14 = arith.constant 0 : index
    %23 = vector.load %arg6[%c0_13, %c0_14] : memref<16x1xf32, #tpu.memory_space<vmem>>, vector<16x1xf32>
    %24 = vector.broadcast %23 : vector<16x1xf32> to vector<16x512xf32>
    %25 = arith.addf %22, %24 : vector<16x512xf32>
    %cst_15 = arith.constant 5.000000e-01 : f32
    %26 = vector.broadcast %cst_15 : f32 to vector<16x512xf32>
    %27 = arith.mulf %26, %25 : vector<16x512xf32>
    %28 = math.tanh %27 : vector<16x512xf32>
    %cst_16 = arith.constant 5.000000e-01 : f32
    %29 = vector.broadcast %cst_16 : f32 to vector<16x512xf32>
    %30 = arith.mulf %29, %28 : vector<16x512xf32>
    %cst_17 = arith.constant 5.000000e-01 : f32
    %31 = vector.broadcast %cst_17 : f32 to vector<16x512xf32>
    %32 = arith.addf %30, %31 : vector<16x512xf32>
    %c0_18 = arith.constant 0 : index
    %c0_19 = arith.constant 0 : index
    %33 = vector.load %arg7[%c0_18, %c0_19] : memref<16x1xf32, #tpu.memory_space<vmem>>, vector<16x1xf32>
    %34 = vector.broadcast %33 : vector<16x1xf32> to vector<16x512xf32>
    %35 = arith.mulf %34, %32 : vector<16x512xf32>
    %cst_20 = arith.constant dense<0.000000e+00> : vector<512xf32>
    %36 = vector.multi_reduction <add>, %35, %cst_20 [0] : vector<16x512xf32> to vector<512xf32>
    %37 = vector.shape_cast %36 : vector<512xf32> to vector<1x512xf32>
    %c0_21 = arith.constant 0 : index
    %38 = memref.load %arg8[%c0_21] : memref<1xf32, #tpu.memory_space<smem>>
    %39 = vector.broadcast %38 : f32 to vector<1x512xf32>
    %40 = arith.addf %37, %39 : vector<1x512xf32>
    %41 = math.tanh %40 : vector<1x512xf32>
    %c0_22 = arith.constant 0 : index
    %c0_23 = arith.constant 0 : index
    %42 = vector.load %arg9[%c0_22, %c0_23] : memref<1x512xf32, #tpu.memory_space<vmem>>, vector<1x512xf32>
    tpu.vector_store %arg9[%c0_22, %c0_23], %41 {strides = array<i32>} : memref<1x512xf32, #tpu.memory_space<vmem>>, vector<1x512xf32>,
    return
  }
  func.func @transform_0(%arg0: i32) -> (i32, i32) {
    %c0_i32 = arith.constant 0 : i32
    %c0_i32_0 = arith.constant 0 : i32
    return %c0_i32, %arg0 : i32, i32
  }
  func.func @transform_1(%arg0: i32) -> (i32, i32) {
    %c0_i32 = arith.constant 0 : i32
    %c0_i32_0 = arith.constant 0 : i32
    %c0_i32_1 = arith.constant 0 : i32
    return %c0_i32, %c0_i32_0 : i32, i32
  }
  func.func @transform_2(%arg0: i32) -> (i32, i32) {
    %c0_i32 = arith.constant 0 : i32
    %c0_i32_0 = arith.constant 0 : i32
    %c0_i32_1 = arith.constant 0 : i32
    return %c0_i32, %c0_i32_0 : i32, i32
  }
  func.func @transform_3(%arg0: i32) -> (i32, i32) {
    %c0_i32 = arith.constant 0 : i32
    %c0_i32_0 = arith.constant 0 : i32
    %c0_i32_1 = arith.constant 0 : i32
    return %c0_i32, %c0_i32_0 : i32, i32
  }
  func.func @transform_4(%arg0: i32) -> (i32, i32) {
    %c0_i32 = arith.constant 0 : i32
    %c0_i32_0 = arith.constant 0 : i32
    %c0_i32_1 = arith.constant 0 : i32
    return %c0_i32, %c0_i32_0 : i32, i32
  }
  func.func @transform_5(%arg0: i32) -> (i32, i32) {
    %c0_i32 = arith.constant 0 : i32
    %c0_i32_0 = arith.constant 0 : i32
    %c0_i32_1 = arith.constant 0 : i32
    return %c0_i32, %c0_i32_0 : i32, i32
  }
  func.func @transform_6(%arg0: i32) -> (i32, i32) {
    %c0_i32 = arith.constant 0 : i32
    %c0_i32_0 = arith.constant 0 : i32
    %c0_i32_1 = arith.constant 0 : i32
    return %c0_i32, %c0_i32_0 : i32, i32
  }
  func.func @transform_7(%arg0: i32) -> i32 {
    %c0_i32 = arith.constant 0 : i32
    %c0_i32_0 = arith.constant 0 : i32
    return %c0_i32 : i32
  }
  func.func @transform_8(%arg0: i32) -> (i32, i32) {
    %c0_i32 = arith.constant 0 : i32
    %c0_i32_0 = arith.constant 0 : i32
    return %c0_i32, %arg0 : i32, i32
  }
}

</mosaic_0001>

<bundles_post_ra>
// kernel: tpu_custom_call.1
= control target key start
LH: loop header
LB: loop body
LE: loop exit
PB: predicated region body
PF: predicated region fallthrough
CT: control target
= control target key end

     0   :  { %s1200_s0 = inlined_call_operand.vmem [shape: f32[2,1024], index: 0, kind: input, shape index: {}]   ;;  %s1201_s1 = inlined_call_operand.vmem [shape: f32[16,1], index: 1, kind: input, shape index: {}]   ;;  %s1202_s2 = inlined_call_operand.vmem [shape: f32[16,1], index: 2, kind: input, shape index: {}]   ;;  %s1203_s3 = inlined_call_operand.vmem [shape: f32[16,1], index: 3, kind: input, shape index: {}]   ;;  %s1204_s4 = inlined_call_operand.vmem [shape: f32[16,16], index: 4, kind: input, shape index: {}]   ;;  %s1205_s5 = inlined_call_operand.vmem [shape: f32[16,1], index: 5, kind: input, shape index: {}]   ;;  %s1206_s6 = inlined_call_operand.vmem [shape: f32[16,1], index: 6, kind: input, shape index: {}]   ;;  %s1207_s7 = inlined_call_operand.<no memory space> [shape: f32[1], index: 7, kind: input, shape index: {}]   ;;  %s1208_s8 = inlined_call_operand.hbm [shape: f32[1,1024], index: 8, kind: output, shape index: {}]  }
   0x1   :  { %13 = sst [smem:[#allocation2]] %s1207_s7 }
   0x2   :  { %14 = vsyncpa [#allocation4], 0 }
   0x3   :  { %16 = vsyncpa [#allocation4 + $0x1], 0  ;;  %s1052_s29 = smov 0   ;;  %s1054_s30 = smov 0  }
   0x4   :  { %s1056_s9 = smov 0   ;;  %s1058_s10 = smov 0  }
   0x5 LB: > { %s1073_s7 = sadd.s32 4294967295, %s998_s10   ;;  %s826_s11 = sadd.s32 4294967294, %s998_s10   ;;  %s998_s10 = sphi %s1058_s10, %s1214_s10   ;;  %s994_s9 = sphi %s1056_s9, %s1213_s9   ;;  %s990_s30 = sphi %s1054_s30, %s1212_s30   ;;  %s986_s29 = sphi %s1052_s29, %s1211_s29  }
   0x6   : > { %s1077_s12 = sadd.s32 1, %s998_s10   ;;  %s202_s13 = sadd.s32 1, %s994_s9 }
   0x7   : > { %s199_s14 = ssub.s32 %s998_s10, %s1077_s12  ;;  %p212_p0 = scmp.ne.s32.totalorder %s994_s9, %s990_s30 }
   0x8   : > { %p200_p1 = scmp.eq.s32.totalorder %s199_s14, 0  ;;  %p213_p2 = scmp.eq.s32.totalorder %s1073_s7, 1 }
   0x9   : > { %p218_p3 = scmp.ne.s32.totalorder %s990_s30, %s986_s29  ;;  %p219_p4 = scmp.eq.s32.totalorder %s826_s11, 1 }
   0xa   : > { %s1088_s15 = scalar_select %p200_p1, %s994_s9, %s202_s13  }
   0xb   : > { %p1090_p5 = por %p213_p2, %p212_p0  ;;  %p1094_p6 = por %p219_p4, %p218_p3 }
   0xc   : > { %p829_p7 = scmp.ge.s32.totalorder %s998_s10, 1  ;;  %p267_p8 = scmp.lt.s32.totalorder %s998_s10, 3 }
   0xe   : > { %p268_p9 = pnand %p829_p7, %p267_p8 }
   0xf   : > { %v352_v0 = vld [vmem:[%s1202_s2] sm:$0xff] (!%p268_p9)  ;;  %v1000_v2 = vmov (!%p268_p9), 0   ;;  %v353_v3 = vld [vmem:[%s1202_s2 + $0x8] sm:$0xff] (!%p268_p9)  ;;  %v1001_v11 = vmov (!%p268_p9), 0.0   ;;  %s831_s24 = sshll.u32 (!%p268_p9), %s1073_s7, 2  ;;  %v324_v12 = vlaneseq (!%p268_p9)  ;;  %vm467_vm0 = vcmask (!%p268_p9), 130048  }
  0x10   : > { %271 = sbr.rel (%p268_p9) target bundleno = 471 (0x1d7), region = 52  ;;  %v311_v1 = vld [vmem:[%s1201_s1] sm:$0xff] (!%p268_p9)  ;;  %895 = vset.pattern.permute.xlu1 (!%p268_p9), %v1000_v2  ;;  %894 = vset.pattern.permute.xlu0 (!%p268_p9), %v1000_v2  ;;  %v312_v4 = vld [vmem:[%s1201_s1 + $0x8] sm:$0xff] (!%p268_p9)  ;;  %p302_p10 = scmp.lt.s32.totalorder (!%p268_p9), %s831_s24, 7 }
  0x11   : > { %356 = vperm.xlu1 (!%p268_p9), %895, %v352_v0   ;;  %315 = vperm.xlu0 (!%p268_p9), %894, %v311_v1   ;;  %v402_v5 = vld [vmem:[%s1203_s3 + $0x8] sm:$0xff] (!%p268_p9)  ;;  %v401_v6 = vld [vmem:[%s1203_s3] sm:$0xff] (!%p268_p9)  ;;  %v1134_v13 = vshrl.u32 (!%p268_p9), %v324_v12, 7  ;;  %s708_s19 = sld [smem:[#allocation2]] (!%p268_p9)  ;;  %s298_s20 = sand.u32 (!%p268_p9), 1, %s990_s30   ;;  %vm749_vm1 = vcmp.lt.s32.totalorder (!%p268_p9), %v324_v12, 512 }
  0x12   : > { %v456_v7 = vld [vmem:[%s1205_s5 + $0x8] sm:$0xff] (!%p268_p9)  ;;  %v455_v8 = vld [vmem:[%s1205_s5] sm:$0xff] (!%p268_p9)  ;;  %538 = vmatprep.mubr.f32.mxu0 (!%p268_p9), %v1001_v11  ;;  %615 = vmatprep.mubr.f32.mxu1 (!%p268_p9), %v1001_v11  ;;  %s830_s21 = sshll.u32 (!%p268_p9), %s298_s20, 2  ;;  %s843_s22 = sshll.u32 (!%p268_p9), %s1073_s7, 6 }
  0x13   : > { %v661_v9 = vld [vmem:[%s1206_s6 + $0x8] sm:$0xff] (!%p268_p9)  ;;  %v660_v10 = vld [vmem:[%s1206_s6] sm:$0xff] (!%p268_p9)  ;;  %v326_v14 = vsub.s32 (!%p268_p9), 0, %v1134_v13  ;;  %v330_v15 = vsub.s32 (!%p268_p9), 1, %v1134_v13  ;;  %v338_v16 = vsub.s32 (!%p268_p9), 3, %v1134_v13  ;;  %v334_v18 = vsub.s32 (!%p268_p9), 2, %v1134_v13  ;;  %s1158_s27 = scalar_lea.hbm (!%p268_p9), %s1208_s8, %s843_s22 }
  0x14   : > { %s300_s23 = scalar_lea.vmem (!%p268_p9), [#allocation3], %s830_s21  ;;  %s1003_s7 = smov (!%p268_p9), [#allocation3]  }
  0x15   : > { %361 = vperm.xlu1 (!%p268_p9), %895, %v353_v3   ;;  %320 = vperm.xlu0 (!%p268_p9), %894, %v312_v4   ;;  %s940_s13 = sshll.u32 (!%p268_p9), %s1003_s7, 4  ;;  %s941_s13 = int_to_ptr.vmem [resolvable:$false] %s940_s13 }
  0x16   : > { %s942_s14 = scalar_lea.vmem (!%p268_p9), %s941_s13, 128 }
  0x17   : > { %s1216_s24 = smov (!%p302_p10, %s831_s24), 7 }
  0x18   : > { %s832_s25 = sshll.u32 %s1216_s24, 1  ;;  %s767_s24 = sshll.u32 %s300_s23, 4  ;;  %s1160_s24 = int_to_ptr.vmem [resolvable:$true] %s767_s24 }
  0x19   : > { %410 = vperm.xlu1 %895, %v402_v5   ;;  %405 = vperm.xlu0 %894, %v401_v6   ;;  %s305_s28 = scalar_lea.vmem %s1200_s0, %s832_s25  ;;  %s936_s11 = scalar_lea.vmem %s1160_s24, 64 }
  0x1a   : > { %v833_v17 = vld [vmem:[%s305_s28 + $0x1] ss:$2 sm:$0xf]  ;;  %v308_v19 = vld [vmem:[%s305_s28] ss:$2 sm:$0xf]  ;;  %p937_p11 = scmp.ne.s32.totalorder %s1160_s24, %s936_s11  ;;  %p943_p0 = scmp.lt.s32.totalorder %s1160_s24, %s941_s13 }
  0x1b   : > { %v368_v20 = vrot.slane %v833_v17, %v326_v14  ;;  %v372_v21 = vrot.slane %v833_v17, %v330_v15  ;;  %v380_v22 = vrot.slane %v833_v17, %v338_v16  ;;  %v327_v23 = vrot.slane %v308_v19, %v326_v14  ;;  %s753_s28 = scalar_lea.sflag [#allocation4], %s298_s20  ;;  %p944_p1 = scmp.lt.s32.totalorder %s942_s14, %s936_s11 }
  0x1c   : > { %v331_v24 = vrot.slane %v308_v19, %v330_v15  ;;  %v339_v25 = vrot.slane %v308_v19, %v338_v16  ;;  %v376_v27 = vrot.slane %v833_v17, %v334_v18  ;;  %v335_v29 = vrot.slane %v308_v19, %v334_v18  ;;  %p938_p12 = pnand %p937_p11, %p1090_p5 }
  0x1d   : > { %464 = vperm.xlu1 %895, %v456_v7   ;;  %459 = vperm.xlu0 %894, %v455_v8   ;;  %p945_p2 = por %p944_p1, %p943_p0 }
  0x1e   : > { %p939_p13 = pneg %p938_p12 }
  0x20   : > { %p946_p3 = pnand %p945_p2, %p939_p13 }
  0x21   : > { %669 = vperm.xlu1 %895, %v661_v9   ;;  %664 = vperm.xlu0 %894, %v660_v10  }
  0x90   : > { %v357_v26 = vpop.permute.xlu1 %356  ;;  %v316_v28 = vpop.permute.xlu0 %315 }
  0x91   : > { %v385_v30 = vmul.f32 %v368_v20, %v357_v26  ;;  %v386_v31 = vmul.f32 %v372_v21, %v357_v26  ;;  %v388_v32 = vmul.f32 %v380_v22, %v357_v26  ;;  %v344_v33 = vmul.f32 %v327_v23, %v316_v28 }
  0x92   : > { %v345_v34 = vmul.f32 %v331_v24, %v316_v28  ;;  %v347_v35 = vmul.f32 %v339_v25, %v316_v28  ;;  %v387_v36 = vmul.f32 %v376_v27, %v357_v26  ;;  %v346_v37 = vmul.f32 %v335_v29, %v316_v28 }
  0x93   : > { %v393_v48 = vadd.f32 %v385_v30, %v344_v33 }
  0x94   : > { %v362_v38 = vpop.permute.xlu1 %361  ;;  %v321_v39 = vpop.permute.xlu0 %320  ;;  %v394_v49 = vadd.f32 %v386_v31, %v345_v34  ;;  %v396_v50 = vadd.f32 %v388_v32, %v347_v35  ;;  %v395_v57 = vadd.f32 %v387_v36, %v346_v37 }
  0x95   : > { %v389_v40 = vmul.f32 %v368_v20, %v362_v38  ;;  %v390_v41 = vmul.f32 %v372_v21, %v362_v38  ;;  %v391_v42 = vmul.f32 %v376_v27, %v362_v38  ;;  %v392_v43 = vmul.f32 %v380_v22, %v362_v38 }
  0x96   : > { %v348_v44 = vmul.f32 %v327_v23, %v321_v39  ;;  %v349_v45 = vmul.f32 %v331_v24, %v321_v39  ;;  %v350_v46 = vmul.f32 %v335_v29, %v321_v39  ;;  %v351_v47 = vmul.f32 %v339_v25, %v321_v39 }
  0x98   : > { %v411_v51 = vpop.permute.xlu1 %410  ;;  %v397_v52 = vadd.f32 %v389_v40, %v348_v44  ;;  %v398_v53 = vadd.f32 %v390_v41, %v349_v45  ;;  %v399_v54 = vadd.f32 %v391_v42, %v350_v46  ;;  %v400_v55 = vadd.f32 %v392_v43, %v351_v47  ;;  %v406_v56 = vpop.permute.xlu0 %405  ;;  %v453_v41 = vld [vmem:[%s1204_s4] sm:$0xff]  ;;  %v454_v42 = vld [vmem:[%s1204_s4 + $0x8] sm:$0xff] }
  0x99   : > { %v413_v58 = vadd.f32 %v406_v56, %v393_v48  ;;  %v414_v59 = vadd.f32 %v406_v56, %v394_v49  ;;  %v416_v60 = vadd.f32 %v406_v56, %v396_v50  ;;  %v415_v0 = vadd.f32 %v406_v56, %v395_v57 }
  0x9a   : > { %v417_v61 = vadd.f32 %v411_v51, %v397_v52  ;;  %v418_v62 = vadd.f32 %v411_v51, %v398_v53  ;;  %v420_v63 = vadd.f32 %v411_v51, %v400_v55  ;;  %v419_v3 = vadd.f32 %v411_v51, %v399_v54 }
  0x9b   : > { %v422_v1 = vmul.f32 0.5, %v414_v59  ;;  %v424_v2 = vmul.f32 0.5, %v416_v60  ;;  %v421_v6 = vmul.f32 0.5, %v413_v58  ;;  %v423_v8 = vmul.f32 0.5, %v415_v0 }
  0x9c   : > { %v426_v4 = vmul.f32 0.5, %v418_v62  ;;  %v428_v5 = vmul.f32 0.5, %v420_v63  ;;  %v425_v7 = vmul.f32 0.5, %v417_v61  ;;  %v427_v9 = vmul.f32 0.5, %v419_v3  ;;  %v460_v43 = vpop.permute.xlu0 %459  ;;  %v465_v52 = vpop.permute.xlu1 %464 }
  0x9d   : > { %896 = vtanh.f32 %v422_v1 }
  0x9e   : > { %898 = vtanh.f32 %v426_v4 }
  0x9f   : > { %900 = vtanh.f32 %v424_v2 }
  0xa0   : > { %902 = vtanh.f32 %v428_v5 }
  0xa1   : > { %904 = vtanh.f32 %v421_v6 }
  0xa2   : > { %906 = vtanh.f32 %v425_v7 }
  0xa3   : > { %908 = vtanh.f32 %v423_v8 }
  0xa4   : > { %910 = vtanh.f32 %v427_v9 }
  0xa7   : > { %v897_v10 = vpop.eup %896 }
  0xa8   : > { %v899_v14 = vpop.eup %898  ;;  %v438_v15 = vmul.f32 0.5, %v897_v10 }
  0xa9   : > { %v901_v16 = vpop.eup %900  ;;  %v442_v17 = vmul.f32 0.5, %v899_v14 }
  0xaa   : > { %v903_v18 = vpop.eup %902  ;;  %v446_v19 = vadd.f32 0.5, %v438_v15  ;;  %v440_v20 = vmul.f32 0.5, %v901_v16 }
  0xab   : > { %v905_v21 = vpop.eup %904  ;;  %v450_v22 = vadd.f32 0.5, %v442_v17  ;;  %v444_v23 = vmul.f32 0.5, %v903_v18 }
  0xac   : > { %v907_v24 = vpop.eup %906  ;;  %v448_v25 = vadd.f32 0.5, %v440_v20  ;;  %v437_v26 = vmul.f32 0.5, %v905_v21 }
  0xad   : > { %v909_v27 = vpop.eup %908  ;;  %v844_v28 = vpack.c.bf16 %v450_v22, %v446_v19  ;;  %v452_v29 = vadd.f32 0.5, %v444_v23  ;;  %v441_v30 = vmul.f32 0.5, %v907_v24 }
  0xae   : > { %v911_v31 = vpop.eup %910  ;;  %v445_v32 = vadd.f32 0.5, %v437_v26  ;;  %v439_v33 = vmul.f32 0.5, %v909_v27  ;;  %v670_v26 = vpop.permute.xlu1 %669 }
  0xaf   : > { %845 = vmatprep.subr.bf16.mxu0 %v844_v28  ;;  %v848_v34 = vpack.c.bf16 %v452_v29, %v448_v25  ;;  %v449_v35 = vadd.f32 0.5, %v441_v30  ;;  %v443_v36 = vmul.f32 0.5, %v911_v31  ;;  %v665_v27 = vpop.permute.xlu0 %664 }
  0xb0   : > { %v447_v37 = vadd.f32 0.5, %v439_v33 }
  0xb1   : > { %849 = vmatprep.subr.bf16.mxu1 %v848_v34  ;;  %v846_v38 = vpack.c.bf16 %v449_v35, %v445_v32  ;;  %v451_v39 = vadd.f32 0.5, %v443_v36 }
  0xb3   : > { %847 = vmatpush1.bf16.msra.mxu0 %v846_v38  ;;  %v850_v40 = vpack.c.bf16 %v451_v39, %v447_v37 }
  0xb5   : > { %851 = vmatpush1.bf16.msra.mxu1 %v850_v40 }
  0xb6   : > { %834 = vmatmul.mubr.msk.f32.vlgmr.msra.gmra.mrb[0].mxu0 %vm467_vm0, %v453_v41 }
  0xb7   : > { %544 = vmatprep.mubr.f32.mxu0 %v1001_v11 }
  0xb8   : > { %836 = vmatmul.mubr.msk.f32.vlgmr.msra.gmra.mrb[0].mxu1 %vm467_vm0, %v453_v41 }
  0xb9   : > { %621 = vmatprep.mubr.f32.mxu1 %v1001_v11 }
  0xba   : > { %835 = vmatmul.mubr.msk.f32.gmra.mrb[2].mxu0 %vm467_vm0, %v454_v42 }
  0xbc   : > { %837 = vmatmul.mubr.msk.f32.gmra.mrb[2].mxu1 %vm467_vm0, %v454_v42 }
 0x189   : > { %v540_v44 = vpop.f32.mrb[0].mxu0 }
 0x18a   : > { %v541_v45 = vadd.f32 %v540_v44, %v460_v43  ;;  %v542_v46 = vpop.f32.mrb[1].mxu0 }
 0x18b   : > { %v617_v47 = vpop.f32.mrb[0].mxu1  ;;  %v543_v48 = vadd.f32 %v542_v46, %v460_v43 }
 0x18c   : > { %v628_v49 = vmul.f32 0.5, %v541_v45  ;;  %v618_v50 = vadd.f32 %v617_v47, %v460_v43  ;;  %v619_v51 = vpop.f32.mrb[1].mxu1 }
 0x18d   : > { %v629_v53 = vmul.f32 0.5, %v543_v48  ;;  %v620_v54 = vadd.f32 %v619_v51, %v460_v43  ;;  %v546_v55 = vpop.f32.mrb[2].mxu0 }
 0x18e   : > { %912 = vtanh.f32 %v628_v49  ;;  %v630_v56 = vmul.f32 0.5, %v618_v50  ;;  %v547_v57 = vadd.f32 %v546_v55, %v465_v52  ;;  %v548_v58 = vpop.f32.mrb[3].mxu0 }
 0x18f   : > { %914 = vtanh.f32 %v629_v53  ;;  %v631_v11 = vmul.f32 0.5, %v620_v54  ;;  %v623_v59 = vpop.f32.mrb[2].mxu1  ;;  %v549_v60 = vadd.f32 %v548_v58, %v465_v52 }
 0x190   : > { %916 = vtanh.f32 %v630_v56  ;;  %v632_v61 = vmul.f32 0.5, %v547_v57  ;;  %v624_v62 = vadd.f32 %v623_v59, %v465_v52  ;;  %v625_v63 = vpop.f32.mrb[3].mxu1 }
 0x191   : > { %918 = vtanh.f32 %v631_v11  ;;  %v633_v0 = vmul.f32 0.5, %v549_v60  ;;  %v626_v1 = vadd.f32 %v625_v63, %v465_v52  ;;  %v709_v60 = vstv %s708_s19 }
 0x192   : > { %920 = vtanh.f32 %v632_v61  ;;  %v634_v2 = vmul.f32 0.5, %v624_v62 }
 0x193   : > { %922 = vtanh.f32 %v633_v0  ;;  %v635_v3 = vmul.f32 0.5, %v626_v1 }
 0x194   : > { %924 = vtanh.f32 %v634_v2 }
 0x195   : > { %926 = vtanh.f32 %v635_v3 }
 0x198   : > { %v913_v4 = vpop.eup %912 }
 0x199   : > { %v915_v5 = vpop.eup %914  ;;  %v644_v6 = vmul.f32 0.5, %v913_v4 }
 0x19a   : > { %v917_v7 = vpop.eup %916  ;;  %v645_v8 = vmul.f32 0.5, %v915_v5 }
 0x19b   : > { %v919_v9 = vpop.eup %918  ;;  %v646_v10 = vmul.f32 0.5, %v917_v7  ;;  %v652_v17 = vadd.f32 0.5, %v644_v6 }
 0x19c   : > { %v921_v14 = vpop.eup %920  ;;  %v647_v15 = vmul.f32 0.5, %v919_v9  ;;  %v653_v20 = vadd.f32 0.5, %v645_v8  ;;  %v1002_v9 = vmov 1966171168  }
 0x19d   : > { %v923_v16 = vpop.eup %922  ;;  %v648_v18 = vmul.f32 0.5, %v921_v14  ;;  %v654_v23 = vadd.f32 0.5, %v646_v10  ;;  %v672_v31 = vmul.f32 %v665_v27, %v652_v17  ;;  %v725_v10 = vunpack.c.l.s4 %v1002_v9 }
 0x19e   : > { %v925_v19 = vpop.eup %924  ;;  %v649_v21 = vmul.f32 0.5, %v923_v16  ;;  %v655_v28 = vadd.f32 0.5, %v647_v15  ;;  %v673_v34 = vmul.f32 %v665_v27, %v653_v20 }
 0x19f   : > { %v927_v22 = vpop.eup %926  ;;  %v656_v24 = vadd.f32 0.5, %v648_v18  ;;  %v650_v25 = vmul.f32 0.5, %v925_v19  ;;  %v674_v37 = vmul.f32 %v665_v27, %v654_v23  ;;  %v726_v14 = vunpack.c.0.s8 %v725_v10 }
 0x1a0   : > { %v657_v29 = vadd.f32 0.5, %v649_v21  ;;  %v651_v30 = vmul.f32 0.5, %v927_v22  ;;  %v675_v40 = vmul.f32 %v665_v27, %v655_v28 }
 0x1a1   : > { %v676_v32 = vmul.f32 %v670_v26, %v656_v24  ;;  %v658_v33 = vadd.f32 0.5, %v650_v25  ;;  %v729_v16 = vsub.s32 %v726_v14, %v1134_v13 }
 0x1a2   : > { %v677_v35 = vmul.f32 %v670_v26, %v657_v29  ;;  %v659_v36 = vadd.f32 0.5, %v651_v30 }
 0x1a3   : > { %v680_v38 = vadd.f32 %v676_v32, %v672_v31  ;;  %v678_v39 = vmul.f32 %v670_v26, %v658_v33 }
 0x1a4   : > { %v687_v41 = vadd.f32 %v677_v35, %v673_v34  ;;  %v679_v42 = vmul.f32 %v670_v26, %v659_v36 }
 0x1a5   : > { %v681_v43 = vrot.slane %v680_v38, 4  ;;  %v694_v44 = vadd.f32 %v678_v39, %v674_v37 }
 0x1a6   : > { %v688_v45 = vrot.slane %v687_v41, 4  ;;  %v701_v46 = vadd.f32 %v679_v42, %v675_v40 }
 0x1a7   : > { %v682_v47 = vadd.f32 %v681_v43, %v680_v38  ;;  %v695_v48 = vrot.slane %v694_v44, 4 }
 0x1a8   : > { %v689_v49 = vadd.f32 %v688_v45, %v687_v41  ;;  %v702_v50 = vrot.slane %v701_v46, 4 }
 0x1a9   : > { %v683_v51 = vrot.slane %v682_v47, 2  ;;  %v696_v52 = vadd.f32 %v695_v48, %v694_v44 }
 0x1aa   : > { %v690_v53 = vrot.slane %v689_v49, 2  ;;  %v703_v54 = vadd.f32 %v702_v50, %v701_v46 }
 0x1ab   : > { %v684_v55 = vadd.f32 %v683_v51, %v682_v47  ;;  %v697_v56 = vrot.slane %v696_v52, 2 }
 0x1ac   : > { %v691_v57 = vadd.f32 %v690_v53, %v689_v49  ;;  %v704_v58 = vrot.slane %v703_v54, 2 }
 0x1ad   : > { %v685_v11 = vrot.slane %v684_v55, 1  ;;  %v698_v59 = vadd.f32 %v697_v56, %v696_v52 }
 0x1ae   : > { %v692_v61 = vrot.slane %v691_v57, 1  ;;  %v705_v62 = vadd.f32 %v704_v58, %v703_v54 }
 0x1af   : > { %v686_v63 = vadd.f32 %v685_v11, %v684_v55  ;;  %v699_v0 = vrot.slane %v698_v59, 1 }
 0x1b0   : > { %v693_v1 = vadd.f32 %v692_v61, %v691_v57  ;;  %v706_v2 = vrot.slane %v705_v62, 1 }
 0x1b1   : > { %v710_v3 = vadd.f32 %v709_v60, %v686_v63  ;;  %v700_v4 = vadd.f32 %v699_v0, %v698_v59 }
 0x1b2   : > { %v711_v5 = vadd.f32 %v709_v60, %v693_v1  ;;  %v707_v6 = vadd.f32 %v706_v2, %v705_v62 }
 0x1b3   : > { %928 = vtanh.f32 %v710_v3  ;;  %v712_v7 = vadd.f32 %v709_v60, %v700_v4 }
 0x1b4   : > { %930 = vtanh.f32 %v711_v5  ;;  %v713_v8 = vadd.f32 %v709_v60, %v707_v6 }
 0x1b5   : > { %932 = vtanh.f32 %v712_v7 }
 0x1b6   : > { %934 = vtanh.f32 %v713_v8 }
 0x1bd   : > { %v929_v15 = vpop.eup %928 }
 0x1be   : > { %v931_v17 = vpop.eup %930 }
 0x1bf   : > { %v933_v18 = vpop.eup %932  ;;  %v722_v19 = vcombine.low %v929_v15, %v931_v17 }
 0x1c0   : > { %v935_v20 = vpop.eup %934 }
 0x1c1   : > { %v723_v21 = vcombine.low %v933_v18, %v935_v20  ;;  %v730_v22 = vrot.slane %v722_v19, %v729_v16 }
 0x1c3   : > { %v737_v23 = vrot.slane %v723_v21, %v729_v16 }
 0x1c5   : > { %v738_v24 = vcombine.low %v730_v22, %v737_v23 }
 0x1c7   : > { %v745_v25 = vrot.slane %v738_v24, %v729_v16 }
 0x1c9   : > { %751 = vst.msk [vmem:[%s300_s23] sm:$0xf] %vm749_vm1, %v745_v25 }
 0x1ca   : > { %949 = shalt.err (!%p946_p3)
}
 0x1cb   : > { %s950_s18 = scalar_lea.hbm %s1158_s27, 64  ;;  %s954_s21 = scalar_lea.hbm %s1208_s8, 128 }
 0x1cc   : > { %p951_p4 = scmp.ne.s32.totalorder %s1158_s27, %s950_s18  ;;  %p955_p9 = scmp.lt.u32.totalorder %s1158_s27, %s1208_s8 }
 0x1cd   : > { %p956_p10 = scmp.lt.u32.totalorder %s954_s21, %s950_s18  ;;  %p958_p12 = scmp.lt.u32.totalorder %s950_s18, %s1158_s27 }
 0x1ce   : > { %p952_p7 = pnand %p951_p4, %p1090_p5 }
 0x1cf   : > { %p957_p11 = por %p956_p10, %p955_p9 }
 0x1d0   : > { %p953_p8 = pneg %p952_p7 }
 0x1d1   : > { %p959_p13 = por %p958_p12, %p957_p11 }
 0x1d3   : > { %p960_p0 = pnand %p959_p13, %p953_p8 }
 0x1d5   : > { %963 = shalt.err (!%p960_p0)
}
 0x1d6   : > { %852 = dma.vmem_to_hbm [thread:$0]  (%p1090_p5), %s1160_s24, 64, %s1158_s27, %s753_s28  }
 0x1d7 PF: > { %p858_p1 = scmp.ge.s32.totalorder %s998_s10, 2  ;;  %s779_s25 = sand.u32 1, %s986_s29  }
 0x1d8   : > { %s780_s26 = scalar_lea.sflag [#allocation4], %s779_s25 }
 0x1d9   : > { %p855_p2 = pnand %p858_p1, %p1094_p6 }
 0x1db   : > { %981 = dma.done.wait (!%p855_p2), %s780_s26, 64  }
 0x1dc   : > { %983 = vsyncadd (!%p855_p2), %s780_s26, 4294967232  ;;  %p19_p3 = scmp.ge.s32.totalorder %s1077_s12, 4   ;;  %s1211_s29 = smov %s990_s30 }
 0x1dd   : > { %s1212_s30 = smov %s994_s9  ;;  %s1213_s9 = smov %s1088_s15 }
 0x1de   : > { %s1214_s10 = smov %s1077_s12  ;;  %21 = sbr.rel (!%p19_p3) target bundleno = 5 (0x5), region = 88 }
 0x1e5   :  { %785 = vsyncpa [#allocation4], 1 }
 0x1e6   :  { %787 = vsyncpa [#allocation4 + $0x1], 1 }

</bundles_post_ra>
